<compile_context>
chip_gen: v5e
topology: v5e:2x2
jax: 0.10.0
libtpu: 0.0.40
codegen_flags: <defaults>
</compile_context>

<pallas_src>
import jax
import jax.numpy as jnp
from jax.experimental import pallas as pl
from jax.experimental.pallas import tpu as pltpu

EPS = 1e-5      # PyTorch BatchNorm2d default
LANE = 128      # TPU lane width
VMEM_LIMIT = 32 * 1024 * 1024  # safe on v5e/v6e/v7x; tiles below use < 1 MiB


def _round_up(x, m):
    return (x + m - 1) // m * m


# ---------------------------------------------------------------------------
# Phase A: conv1 (1x1, no bias) + ReLU + partial BN statistics, h spilled bf16.
# ---------------------------------------------------------------------------
def _make_stage_a_kernel(n_feat):
    def kernel(*refs):
        x_refs = refs[:n_feat]                 # each [TP, Cf]   bf16
        w1_refs = refs[n_feat:2 * n_feat]      # each [Cf, Cpad] bf16
        h_ref, sum_ref, sq_ref = refs[2 * n_feat:]

        # 1x1 conv == matmul; accumulate the per-feature channel groups (this is
        # exactly cat(features, dim=1) followed by one matmul, without the concat).
        h = jnp.dot(x_refs[0][...], w1_refs[0][...],
                    preferred_element_type=jnp.float32)
        for i in range(1, n_feat):
            h = h + jnp.dot(x_refs[i][...], w1_refs[i][...],
                            preferred_element_type=jnp.float32)

        # ReLU
        h = jnp.maximum(h, 0.0)

        # Spill activation for the apply pass (bf16 halves HBM traffic).
        h_ref[...] = h.astype(h_ref.dtype)

        # Per-tile partial BatchNorm statistics, accumulated in f32.
        s = jnp.sum(h, axis=0, keepdims=True)        # [1, Cpad]
        sq = jnp.sum(h * h, axis=0, keepdims=True)   # [1, Cpad]
        sum_ref[...] = jnp.broadcast_to(s, sum_ref.shape)   # [8, Cpad]
        sq_ref[...] = jnp.broadcast_to(sq, sq_ref.shape)
    return kernel


# ---------------------------------------------------------------------------
# Phase B: folded BatchNorm + out 1x1 conv:  out = h @ (scale*w2) + (shift@w2 + b2)
# ---------------------------------------------------------------------------
def _stage_b_kernel(h_ref, w2_ref, b2_ref, o_ref):
    o_ref[...] = (
        jnp.dot(h_ref[...], w2_ref[...], preferred_element_type=jnp.float32)
        + b2_ref[...]
    ).astype(o_ref.dtype)


def segformer_segmentation_head(features, w1, gamma, beta, w2, b2, *, tile_p=256):
    """features: list of [B, C, H, W] arrays (NCHW).  Returns [B, num_classes, H, W]."""
    n_feat = len(features)
    B, Cf, H, W = features[0].shape
    Cin, C = w1.shape
    NC = w2.shape[1]
    assert Cin == n_feat * Cf and C == Cf

    P = B * H * W
    TP = _round_up(min(tile_p, _round_up(P, 8)), 8)
    P_pad = _round_up(P, TP)
    n_tiles = P_pad // TP

    Cpad = _round_up(C, LANE)
    NCpad = _round_up(NC, LANE)

    # --- layout: NCHW -> channels-last pixel-flattened, per feature, bf16 -------
    def to_flat(f):
        xf = jnp.transpose(f, (0, 2, 3, 1)).reshape(P, Cf)
        xf = jnp.pad(xf, ((0, P_pad - P), (0, 0)))   # zero rows -> contribute 0 to stats
        return xf.astype(jnp.bfloat16)

    x_flats = [to_flat(f) for f in features]

    # First conv weight: pad output channels to Cpad, split per feature group.
    w1_pad = jnp.pad(w1, ((0, 0), (0, Cpad - C))).astype(jnp.bfloat16)
    w1_parts = [w1_pad[i * Cf:(i + 1) * Cf, :] for i in range(n_feat)]

    # --- phase A: conv1 + ReLU + partial stats ----------------------------------
    x_spec = pl.BlockSpec((TP, Cf), lambda i: (i, 0))
    w1_spec = pl.BlockSpec((Cf, Cpad), lambda i: (0, 0))
    h_spec = pl.BlockSpec((TP, Cpad), lambda i: (i, 0))
    stat_spec = pl.BlockSpec((8, Cpad), lambda i: (i, 0))

    cost_a = pl.CostEstimate(
        flops=2 * P_pad * Cin * Cpad,
        transcendentals=0,
        bytes_accessed=2 * P_pad * Cin + 2 * P_pad * Cpad + 2 * Cin * Cpad,
    )

    h_bf16, part_sum, part_sq = pl.pallas_call(
        _make_stage_a_kernel(n_feat),
        grid=(n_tiles,),
        in_specs=[x_spec] * n_feat + [w1_spec] * n_feat,
        out_specs=(h_spec, stat_spec, stat_spec),
        out_shape=(
            jax.ShapeDtypeStruct((P_pad, Cpad), jnp.bfloat16),
            jax.ShapeDtypeStruct((n_tiles * 8, Cpad), jnp.float32),
            jax.ShapeDtypeStruct((n_tiles * 8, Cpad), jnp.float32),
        ),
        compiler_params=pltpu.CompilerParams(
            dimension_semantics=("parallel",),
            vmem_limit_bytes=VMEM_LIMIT,
        ),
        cost_estimate=cost_a,
    )(*x_flats, *w1_parts)

    # --- combine partial stats + fold BatchNorm into the second conv (O(C*NC)) ---
    total_sum = part_sum[::8].sum(axis=0)     # one row per tile (rows are replicated)
    total_sq = part_sq[::8].sum(axis=0)
    inv_p = 1.0 / P                           # real pixel count (padded rows are zero)
    mean = total_sum * inv_p
    var = jnp.maximum(total_sq * inv_p - mean * mean, 0.0)   # biased variance

    gamma_pad = jnp.pad(gamma, (0, Cpad - C))
    beta_pad = jnp.pad(beta, (0, Cpad - C))
    scale = gamma_pad * jax.lax.rsqrt(var + EPS)
    shift = beta_pad - mean * scale

    w2_pad = jnp.pad(w2, ((0, Cpad - C), (0, NCpad - NC)))
    b2_pad = jnp.pad(b2, (0, NCpad - NC))
    w2_eff = (scale[:, None] * w2_pad).astype(jnp.bfloat16)          # [Cpad, NCpad]
    b2_eff = (shift @ w2_pad + b2_pad).reshape(1, NCpad).astype(jnp.float32)

    # --- phase B: folded BN + out conv -------------------------------------------
    cost_b = pl.CostEstimate(
        flops=2 * P_pad * Cpad * NCpad,
        transcendentals=0,
        bytes_accessed=2 * P_pad * Cpad + 4 * P_pad * NCpad + 2 * Cpad * NCpad,
    )

    out_pad = pl.pallas_call(
        _stage_b_kernel,
        grid=(n_tiles,),
        in_specs=[
            pl.BlockSpec((TP, Cpad), lambda i: (i, 0)),
            pl.BlockSpec((Cpad, NCpad), lambda i: (0, 0)),
            pl.BlockSpec((1, NCpad), lambda i: (0, 0)),
        ],
        out_specs=pl.BlockSpec((TP, NCpad), lambda i: (i, 0)),
        out_shape=jax.ShapeDtypeStruct((P_pad, NCpad), jnp.float32),
        compiler_params=pltpu.CompilerParams(
            dimension_semantics=("parallel",),
            vmem_limit_bytes=VMEM_LIMIT,
        ),
        cost_estimate=cost_b,
    )(h_bf16, w2_eff, b2_eff)

    # Strip padding, back to NCHW.
    return out_pad[:P, :NC].reshape(B, H, W, NC).transpose(0, 3, 1, 2)


# ---------------------------------------------------------------------------
# References for verification
# ---------------------------------------------------------------------------
def _reference_matched(features, w1, gamma, beta, w2, b2):
    """Same numerics policy as the kernel (bf16 MXU inputs, bf16 h, folded BN)."""
    x = jnp.concatenate(features, axis=1)
    B, Cin, H, W = x.shape
    xf = jnp.transpose(x, (0, 2, 3, 1)).reshape(-1, Cin).astype(jnp.bfloat16)
    h = jnp.maximum(
        jnp.dot(xf, w1.astype(jnp.bfloat16), preferred_element_type=jnp.float32), 0.0)
    mean = jnp.mean(h, axis=0)
    var = jnp.maximum(jnp.mean(h * h, axis=0) - mean * mean, 0.0)
    scale = gamma * jax.lax.rsqrt(var + EPS)
    shift = beta - mean * scale
    w2_eff = (scale[:, None] * w2).astype(jnp.bfloat16)
    b2_eff = shift @ w2 + b2
    out = jnp.dot(h.astype(jnp.bfloat16), w2_eff,
                  preferred_element_type=jnp.float32) + b2_eff
    return out.reshape(B, H, W, -1).transpose(0, 3, 1, 2)


def _reference_f32(features, w1, gamma, beta, w2, b2):
    """Pure-f32 module semantics (conv1 -> ReLU -> training-mode BN -> conv2)."""
    x = jnp.concatenate(features, axis=1)
    B, Cin, H, W = x.shape
    xf = jnp.transpose(x, (0, 2, 3, 1)).reshape(-1, Cin)
    h = jnp.maximum(xf @ w1, 0.0)
    mean = jnp.mean(h, axis=0, keepdims=True)
    var = jnp.mean((h - mean) ** 2, axis=0, keepdims=True)
    h = (h - mean) / jnp.sqrt(var + EPS) * gamma + beta
    out = h @ w2 + b2
    return out.reshape(B, H, W, -1).transpose(0, 3, 1, 2)


if __name__ == "__main__":
    # Small deterministic setup
    B, channels, num_features, num_classes, H, W = 2, 4, 4, 3, 16, 16
    Cin = channels * num_features

    key = jax.random.PRNGKey(0)
    k_feats, k_w1, k_g, k_b, k_w2, k_b2 = jax.random.split(key, 6)

    feat_keys = jax.random.split(k_feats, num_features)
    features = [
        jax.random.normal(fk, (B, channels, H, W), dtype=jnp.float32)
        for fk in feat_keys
    ]

    # Synthetic parameters in channels-last matmul form.
    w1 = 0.1 * jax.random.normal(k_w1, (Cin, channels), dtype=jnp.float32)
    gamma = 1.0 + 0.1 * jax.random.normal(k_g, (channels,), dtype=jnp.float32)
    beta = 0.05 * jax.random.normal(k_b, (channels,), dtype=jnp.float32)
    w2 = 0.1 * jax.random.normal(k_w2, (channels, num_classes), dtype=jnp.float32)
    b2 = 0.01 * jax.random.normal(k_b2, (num_classes,), dtype=jnp.float32)

    out = segformer_segmentation_head(features, w1, gamma, beta, w2, b2)
    out = jax.block_until_ready(out)
    assert out.shape == (B, num_classes, H, W), out.shape

    # Tight check against a reference with identical numerics policy.
    ref_m = _reference_matched(features, w1, gamma, beta, w2, b2)
    assert jnp.allclose(out, ref_m, atol=5e-3, rtol=5e-3), \
        float(jnp.max(jnp.abs(out - ref_m)))

    # Looser check against pure-f32 module semantics (bounds bf16 approximation).
    ref_f = _reference_f32(features, w1, gamma, beta, w2, b2)
    assert jnp.allclose(out, ref_f, atol=5e-2, rtol=0), \
        float(jnp.max(jnp.abs(out - ref_f)))

    print("KERNEL_OK")
</pallas_src>

<mosaic_0001>
module attributes {stable_mosaic.version = 11 : i64} {
  func.func @kernel(%arg0: i32, %arg1: memref<256x4xbf16, #tpu.memory_space<vmem>>, %arg2: memref<256x4xbf16, #tpu.memory_space<vmem>>, %arg3: memref<256x4xbf16, #tpu.memory_space<vmem>>, %arg4: memref<256x4xbf16, #tpu.memory_space<vmem>>, %arg5: memref<4x128xbf16, #tpu.memory_space<vmem>>, %arg6: memref<4x128xbf16, #tpu.memory_space<vmem>>, %arg7: memref<4x128xbf16, #tpu.memory_space<vmem>>, %arg8: memref<4x128xbf16, #tpu.memory_space<vmem>>, %arg9: memref<256x128xbf16, #tpu.memory_space<vmem>>, %arg10: memref<8x128xf32, #tpu.memory_space<vmem>>, %arg11: memref<8x128xf32, #tpu.memory_space<vmem>>) attributes {dimension_semantics = [#tpu.dimension_semantics<parallel>], iteration_bounds = array<i64: 2>, scalar_prefetch = 0 : i64, scratch_operands = 0 : i64, tpu.core_type = #tpu.core_type<tc>, window_params = [{transform_indices = @transform_0, window_bounds = array<i64: 256, 4>}, {transform_indices = @transform_1, window_bounds = array<i64: 256, 4>}, {transform_indices = @transform_2, window_bounds = array<i64: 256, 4>}, {transform_indices = @transform_3, window_bounds = array<i64: 256, 4>}, {pipeline_mode = #tpu.pipeline_mode<synchronous>, transform_indices = @transform_4, window_bounds = array<i64: 4, 128>}, {pipeline_mode = #tpu.pipeline_mode<synchronous>, transform_indices = @transform_5, window_bounds = array<i64: 4, 128>}, {pipeline_mode = #tpu.pipeline_mode<synchronous>, transform_indices = @transform_6, window_bounds = array<i64: 4, 128>}, {pipeline_mode = #tpu.pipeline_mode<synchronous>, transform_indices = @transform_7, window_bounds = array<i64: 4, 128>}, {transform_indices = @transform_8, window_bounds = array<i64: 256, 128>}, {transform_indices = @transform_9, window_bounds = array<i64: 8, 128>}, {transform_indices = @transform_10, window_bounds = array<i64: 8, 128>}]} {
    %c0 = arith.constant 0 : index
    %c0_0 = arith.constant 0 : index
    %0 = vector.load %arg1[%c0, %c0_0] : memref<256x4xbf16, #tpu.memory_space<vmem>>, vector<256x4xbf16>
    %c0_1 = arith.constant 0 : index
    %c0_2 = arith.constant 0 : index
    %1 = vector.load %arg5[%c0_1, %c0_2] : memref<4x128xbf16, #tpu.memory_space<vmem>>, vector<4x128xbf16>
    %cst = arith.constant dense<0.000000e+00> : vector<256x128xf32>
    %2 = tpu.matmul %0, %1, %cst {dimension_numbers = #tpu.dot_dimension_numbers<[1], [0], [0], [1], [0, 0, 1, 1], [], []>} : vector<256x4xbf16>, vector<4x128xbf16>, vector<256x128xf32> -> vector<256x128xf32>
    %c0_3 = arith.constant 0 : index
    %c0_4 = arith.constant 0 : index
    %3 = vector.load %arg2[%c0_3, %c0_4] : memref<256x4xbf16, #tpu.memory_space<vmem>>, vector<256x4xbf16>
    %c0_5 = arith.constant 0 : index
    %c0_6 = arith.constant 0 : index
    %4 = vector.load %arg6[%c0_5, %c0_6] : memref<4x128xbf16, #tpu.memory_space<vmem>>, vector<4x128xbf16>
    %cst_7 = arith.constant dense<0.000000e+00> : vector<256x128xf32>
    %5 = tpu.matmul %3, %4, %cst_7 {dimension_numbers = #tpu.dot_dimension_numbers<[1], [0], [0], [1], [0, 0, 1, 1], [], []>} : vector<256x4xbf16>, vector<4x128xbf16>, vector<256x128xf32> -> vector<256x128xf32>
    %6 = arith.addf %2, %5 : vector<256x128xf32>
    %c0_8 = arith.constant 0 : index
    %c0_9 = arith.constant 0 : index
    %7 = vector.load %arg3[%c0_8, %c0_9] : memref<256x4xbf16, #tpu.memory_space<vmem>>, vector<256x4xbf16>
    %c0_10 = arith.constant 0 : index
    %c0_11 = arith.constant 0 : index
    %8 = vector.load %arg7[%c0_10, %c0_11] : memref<4x128xbf16, #tpu.memory_space<vmem>>, vector<4x128xbf16>
    %cst_12 = arith.constant dense<0.000000e+00> : vector<256x128xf32>
    %9 = tpu.matmul %7, %8, %cst_12 {dimension_numbers = #tpu.dot_dimension_numbers<[1], [0], [0], [1], [0, 0, 1, 1], [], []>} : vector<256x4xbf16>, vector<4x128xbf16>, vector<256x128xf32> -> vector<256x128xf32>
    %10 = arith.addf %6, %9 : vector<256x128xf32>
    %c0_13 = arith.constant 0 : index
    %c0_14 = arith.constant 0 : index
    %11 = vector.load %arg4[%c0_13, %c0_14] : memref<256x4xbf16, #tpu.memory_space<vmem>>, vector<256x4xbf16>
    %c0_15 = arith.constant 0 : index
    %c0_16 = arith.constant 0 : index
    %12 = vector.load %arg8[%c0_15, %c0_16] : memref<4x128xbf16, #tpu.memory_space<vmem>>, vector<4x128xbf16>
    %cst_17 = arith.constant dense<0.000000e+00> : vector<256x128xf32>
    %13 = tpu.matmul %11, %12, %cst_17 {dimension_numbers = #tpu.dot_dimension_numbers<[1], [0], [0], [1], [0, 0, 1, 1], [], []>} : vector<256x4xbf16>, vector<4x128xbf16>, vector<256x128xf32> -> vector<256x128xf32>
    %14 = arith.addf %10, %13 : vector<256x128xf32>
    %cst_18 = arith.constant 0.000000e+00 : f32
    %15 = vector.broadcast %cst_18 : f32 to vector<256x128xf32>
    %16 = arith.maximumf %14, %15 : vector<256x128xf32>
    %17 = arith.truncf %16 : vector<256x128xf32> to vector<256x128xbf16>
    %c0_19 = arith.constant 0 : index
    %c0_20 = arith.constant 0 : index
    %18 = vector.load %arg9[%c0_19, %c0_20] : memref<256x128xbf16, #tpu.memory_space<vmem>>, vector<256x128xbf16>
    tpu.vector_store %arg9[%c0_19, %c0_20], %17 {strides = array<i32>} : memref<256x128xbf16, #tpu.memory_space<vmem>>, vector<256x128xbf16>,
    %cst_21 = arith.constant dense<0.000000e+00> : vector<128xf32>
    %19 = vector.multi_reduction <add>, %16, %cst_21 [0] : vector<256x128xf32> to vector<128xf32>
    %20 = vector.shape_cast %19 : vector<128xf32> to vector<1x128xf32>
    %21 = arith.mulf %16, %16 : vector<256x128xf32>
    %cst_22 = arith.constant dense<0.000000e+00> : vector<128xf32>
    %22 = vector.multi_reduction <add>, %21, %cst_22 [0] : vector<256x128xf32> to vector<128xf32>
    %23 = vector.shape_cast %22 : vector<128xf32> to vector<1x128xf32>
    %24 = vector.shape_cast %20 : vector<1x128xf32> to vector<1x128xf32>
    %25 = vector.broadcast %24 : vector<1x128xf32> to vector<8x128xf32>
    %c0_23 = arith.constant 0 : index
    %c0_24 = arith.constant 0 : index
    %26 = vector.load %arg10[%c0_23, %c0_24] : memref<8x128xf32, #tpu.memory_space<vmem>>, vector<8x128xf32>
    tpu.vector_store %arg10[%c0_23, %c0_24], %25 {strides = array<i32>} : memref<8x128xf32, #tpu.memory_space<vmem>>, vector<8x128xf32>,
    %27 = vector.shape_cast %23 : vector<1x128xf32> to vector<1x128xf32>
    %28 = vector.broadcast %27 : vector<1x128xf32> to vector<8x128xf32>
    %c0_25 = arith.constant 0 : index
    %c0_26 = arith.constant 0 : index
    %29 = vector.load %arg11[%c0_25, %c0_26] : memref<8x128xf32, #tpu.memory_space<vmem>>, vector<8x128xf32>
    tpu.vector_store %arg11[%c0_25, %c0_26], %28 {strides = array<i32>} : memref<8x128xf32, #tpu.memory_space<vmem>>, vector<8x128xf32>,
    return
  }
  func.func @transform_0(%arg0: i32) -> (i32, i32) {
    %c0_i32 = arith.constant 0 : i32
    %c0_i32_0 = arith.constant 0 : i32
    return %arg0, %c0_i32 : i32, i32
  }
  func.func @transform_1(%arg0: i32) -> (i32, i32) {
    %c0_i32 = arith.constant 0 : i32
    %c0_i32_0 = arith.constant 0 : i32
    return %arg0, %c0_i32 : i32, i32
  }
  func.func @transform_2(%arg0: i32) -> (i32, i32) {
    %c0_i32 = arith.constant 0 : i32
    %c0_i32_0 = arith.constant 0 : i32
    return %arg0, %c0_i32 : i32, i32
  }
  func.func @transform_3(%arg0: i32) -> (i32, i32) {
    %c0_i32 = arith.constant 0 : i32
    %c0_i32_0 = arith.constant 0 : i32
    return %arg0, %c0_i32 : i32, i32
  }
  func.func @transform_4(%arg0: i32) -> (i32, i32) {
    %c0_i32 = arith.constant 0 : i32
    %c0_i32_0 = arith.constant 0 : i32
    %c0_i32_1 = arith.constant 0 : i32
    return %c0_i32, %c0_i32_0 : i32, i32
  }
  func.func @transform_5(%arg0: i32) -> (i32, i32) {
    %c0_i32 = arith.constant 0 : i32
    %c0_i32_0 = arith.constant 0 : i32
    %c0_i32_1 = arith.constant 0 : i32
    return %c0_i32, %c0_i32_0 : i32, i32
  }
  func.func @transform_6(%arg0: i32) -> (i32, i32) {
    %c0_i32 = arith.constant 0 : i32
    %c0_i32_0 = arith.constant 0 : i32
    %c0_i32_1 = arith.constant 0 : i32
    return %c0_i32, %c0_i32_0 : i32, i32
  }
  func.func @transform_7(%arg0: i32) -> (i32, i32) {
    %c0_i32 = arith.constant 0 : i32
    %c0_i32_0 = arith.constant 0 : i32
    %c0_i32_1 = arith.constant 0 : i32
    return %c0_i32, %c0_i32_0 : i32, i32
  }
  func.func @transform_8(%arg0: i32) -> (i32, i32) {
    %c0_i32 = arith.constant 0 : i32
    %c0_i32_0 = arith.constant 0 : i32
    return %arg0, %c0_i32 : i32, i32
  }
  func.func @transform_9(%arg0: i32) -> (i32, i32) {
    %c0_i32 = arith.constant 0 : i32
    %c0_i32_0 = arith.constant 0 : i32
    return %arg0, %c0_i32 : i32, i32
  }
  func.func @transform_10(%arg0: i32) -> (i32, i32) {
    %c0_i32 = arith.constant 0 : i32
    %c0_i32_0 = arith.constant 0 : i32
    return %arg0, %c0_i32 : i32, i32
  }
}

</mosaic_0001>

<bundles_post_ra>
// kernel: tpu_custom_call.1
= control target key start
LH: loop header
LB: loop body
LE: loop exit
PB: predicated region body
PF: predicated region fallthrough
CT: control target
= control target key end

     0   :  { %s3018_s0 = inlined_call_operand.vmem [shape: bf16[512,4], index: 0, kind: input, shape index: {}]   ;;  %s3019_s1 = inlined_call_operand.vmem [shape: bf16[512,4], index: 1, kind: input, shape index: {}]   ;;  %s3020_s2 = inlined_call_operand.vmem [shape: bf16[512,4], index: 2, kind: input, shape index: {}]   ;;  %s3021_s3 = inlined_call_operand.vmem [shape: bf16[512,4], index: 3, kind: input, shape index: {}]   ;;  %s3022_s4 = inlined_call_operand.vmem [shape: bf16[4,128], index: 4, kind: input, shape index: {}]   ;;  %s3023_s5 = inlined_call_operand.vmem [shape: bf16[4,128], index: 5, kind: input, shape index: {}]   ;;  %s3024_s6 = inlined_call_operand.vmem [shape: bf16[4,128], index: 6, kind: input, shape index: {}]   ;;  %s3025_s7 = inlined_call_operand.vmem [shape: bf16[4,128], index: 7, kind: input, shape index: {}]   ;;  %s3026_s8 = inlined_call_operand.hbm [shape: bf16[512,128], index: 8, kind: output, shape index: {0}]   ;;  %s3027_s9 = inlined_call_operand.hbm [shape: f32[16,128], index: 9, kind: output, shape index: {1}]   ;;  %s3028_s10 = inlined_call_operand.hbm [shape: f32[16,128], index: 10, kind: output, shape index: {2}]  }
   0x1   :  { %3030 = sst [smem:[#allocation9_spill]] %s3018_s0 }
   0x2   :  { %3031 = sst [smem:[#allocation10_spill]] %s3019_s1 }
   0x3   :  { %3032 = sst [smem:[#allocation11_spill]] %s3020_s2 }
   0x4   :  { %3033 = sst [smem:[#allocation12_spill]] %s3021_s3 }
   0x5   :  { %3034 = sst [smem:[#allocation13_spill]] %s3022_s4 }
   0x6   :  { %3035 = sst [smem:[#allocation14_spill]] %s3023_s5 }
   0x7   :  { %3036 = sst [smem:[#allocation15_spill]] %s3024_s6 }
   0x8   :  { %16 = vsyncpa [#allocation3], 0 }
   0x9   :  { %18 = vsyncpa [#allocation3 + $0x1], 0 }
   0xa   :  { %19 = vsyncpa [#allocation5], 0 }
   0xb   :  { %21 = vsyncpa [#allocation5 + $0x1], 0  ;;  %s2679_s13 = smov 0   ;;  %s2681_s14 = smov 0  }
   0xc   :  { %s2683_s15 = smov 0   ;;  %s2685_s16 = smov 0  }
   0xd LB: > { %s2700_s17 = sadd.s32 4294967295, %s2620_s16   ;;  %s3029_s18 = sadd.s32 4294967294, %s2620_s16   ;;  %s2620_s16 = sphi %s2685_s16, %s3052_s16   ;;  %s2616_s15 = sphi %s2683_s15, %s3051_s15   ;;  %s2612_s14 = sphi %s2681_s14, %s3050_s14   ;;  %s2608_s13 = sphi %s2679_s13, %s3049_s13  }
   0xe   : > { %s2704_s19 = sadd.s32 1, %s2620_s16   ;;  %s222_s20 = sadd.s32 1, %s2616_s15 }
   0xf   : > { %s219_s21 = ssub.s32 %s2620_s16, %s2704_s19  ;;  %p232_p0 = scmp.ne.s32.totalorder %s2616_s15, %s2612_s14 }
  0x10   : > { %p220_p1 = scmp.eq.s32.totalorder %s219_s21, 0  ;;  %p233_p2 = scmp.eq.s32.totalorder %s2700_s17, 1 }
  0x11   : > { %p238_p3 = scmp.ne.s32.totalorder %s2612_s14, %s2608_s13  ;;  %p239_p4 = scmp.eq.s32.totalorder %s3029_s18, 1 }
  0x12   : > { %s2717_s22 = scalar_select %p220_p1, %s2616_s15, %s222_s20  }
  0x13   : > { %p2719_p5 = por %p233_p2, %p232_p0  ;;  %p2723_p6 = por %p239_p4, %p238_p3 }
  0x14   : > { %p1946_p7 = scmp.ge.s32.totalorder %s2620_s16, 1  ;;  %p357_p8 = scmp.lt.s32.totalorder %s2620_s16, 3 }
  0x16   : > { %p358_p9 = pnand %p1946_p7, %p357_p8 }
  0x17   : > { %s3039_s5 = sld [smem:[#allocation14_spill]] (!%p358_p9)  ;;  %s1950_s29 = sshll.u32 (!%p358_p9), %s2700_s17, 5 }
  0x18   : > { %361 = sbr.rel (%p358_p9) target bundleno = 458 (0x1ca), region = 52  ;;  %s3040_s4 = sld [smem:[#allocation13_spill]] (!%p358_p9) }
  0x19   : > { %s3041_s6 = sld [smem:[#allocation15_spill]] (!%p358_p9)  ;;  %p421_p10 = scmp.lt.s32.totalorder (!%p358_p9), %s1950_s29, 63 }
  0x1a   : > { %s3042_s1 = sld [smem:[#allocation10_spill]] (!%p358_p9)  ;;  %s2283_s26 = sshll.u32 (!%p358_p9), %s2700_s17, 3 }
  0x1b   : > { %s3043_s0 = sld [smem:[#allocation9_spill]] (!%p358_p9) }
  0x1c   : > { %s3044_s2 = sld [smem:[#allocation11_spill]] (!%p358_p9) }
  0x1d   : > { %v511_v0 = vld [vmem:[%s3039_s5] sm:$0x3]  ;;  %vm641_vm0 = vcmask 1041408   ;;  %s3054_s29 = smov (!%p421_p10, %s1950_s29), 63  ;;  %vm592_vm1 = vcmask 31744   ;;  %s3045_s3 = sld [smem:[#allocation12_spill]] }
  0x1e   : > { %v478_v1 = vld [vmem:[%s3040_s4] sm:$0x3]  ;;  %v643_v2 = vsel %vm641_vm0, %v511_v0, 0  ;;  %s1951_s21 = sshll.u32 %s3054_s29, 2 }
  0x1f   : > { %v863_v3 = vsel %vm641_vm0, %v478_v1, 0  ;;  %v986_v4 = vld [vmem:[%s3041_s6] sm:$0x3]  ;;  %652 = vmatpush.bf16.msra.mxu0 %v643_v2 }
  0x20   : > { %v1271_v5 = vld [vmem:[%s3025_s7] sm:$0x3]  ;;  %872 = vmatpush.bf16.msra.mxu1 %v863_v3  ;;  %v1116_v6 = vsel %vm641_vm0, %v986_v4, 0  ;;  %s2745_s27 = scalar_lea.vmem %s3042_s1, %s1951_s21 }
  0x21   : > { %v1401_v7 = vsel %vm641_vm0, %v1271_v5, 0  ;;  %1125 = vmatpush.bf16.msra.mxu2 %v1116_v6  ;;  %s2750_s11 = scalar_lea.vmem %s3043_s0, %s1951_s21  ;;  %v2303_v8 = vld [vmem:[%s2745_s27] sm:$0xff]  ;;  %v2304_v12 = vld [vmem:[%s2745_s27 + $0x8] sm:$0xff]  ;;  %v2305_v16 = vld [vmem:[%s2745_s27 + $0x10] sm:$0xff]  ;;  %s2518_s0 = scalar_lea.hbm %s3026_s8, 256 }
  0x22   : > { %1410 = vmatpush.bf16.msra.mxu3 %v1401_v7  ;;  %v2287_v9 = vld [vmem:[%s2750_s11] sm:$0xff]  ;;  %s2757_s29 = scalar_lea.vmem %s3044_s2, %s1951_s21  ;;  %2022 = vmatmul.msk.bf16.vlgmr.msra.gmra.mxu0 %vm592_vm1, %v2303_v8  ;;  %v2288_v13 = vld [vmem:[%s2750_s11 + $0x8] sm:$0xff]  ;;  %v2289_v17 = vld [vmem:[%s2750_s11 + $0x10] sm:$0xff] }
  0x23   : > { %s2762_s18 = scalar_lea.vmem %s3045_s3, %s1951_s21  ;;  %v2319_v10 = vld [vmem:[%s2757_s29] sm:$0xff]  ;;  %2102 = vmatmul.msk.bf16.vlgmr.msra.gmra.mxu1 %vm592_vm1, %v2287_v9  ;;  %v2320_v14 = vld [vmem:[%s2757_s29 + $0x8] sm:$0xff]  ;;  %v2321_v18 = vld [vmem:[%s2757_s29 + $0x10] sm:$0xff]  ;;  %s2837_s21 = sand.u32 1, %s2612_s14  }
  0x24   : > { %v2335_v11 = vld [vmem:[%s2762_s18] sm:$0xff]  ;;  %2182 = vmatmul.msk.bf16.vlgmr.msra.gmra.mxu2 %vm592_vm1, %v2319_v10  ;;  %v2336_v15 = vld [vmem:[%s2762_s18 + $0x8] sm:$0xff]  ;;  %v2337_v19 = vld [vmem:[%s2762_s18 + $0x10] sm:$0xff]  ;;  %s1947_s28 = sshll.u32 %s2837_s21, 7 }
  0x25   : > { %2262 = vmatmul.msk.bf16.vlgmr.msra.gmra.mxu3 %vm592_vm1, %v2335_v11  ;;  %v2306_v20 = vld [vmem:[%s2745_s27 + $0x18] sm:$0xff]  ;;  %v2307_v24 = vld [vmem:[%s2745_s27 + $0x20] sm:$0xff]  ;;  %v2308_v28 = vld [vmem:[%s2745_s27 + $0x28] sm:$0xff]  ;;  %s2846_s30 = scalar_lea.vmem [#allocation2], %s1947_s28  ;;  %s1729_s28 = scalar_lea.sflag [#allocation3], %s2837_s21 }
  0x26   : > { %v2290_v21 = vld [vmem:[%s2750_s11 + $0x18] sm:$0xff]  ;;  %v2291_v25 = vld [vmem:[%s2750_s11 + $0x20] sm:$0xff]  ;;  %v2292_v29 = vld [vmem:[%s2750_s11 + $0x28] sm:$0xff]  ;;  %s1751_s20 = sshll.u32 %s2846_s30, 4  ;;  %s2940_s20 = int_to_ptr.vmem [resolvable:$true] %s1751_s20 }
  0x27   : > { %v2322_v22 = vld [vmem:[%s2757_s29 + $0x18] sm:$0xff]  ;;  %v2323_v26 = vld [vmem:[%s2757_s29 + $0x20] sm:$0xff]  ;;  %v2324_v30 = vld [vmem:[%s2757_s29 + $0x28] sm:$0xff] }
  0x28   : > { %v2338_v23 = vld [vmem:[%s2762_s18 + $0x18] sm:$0xff]  ;;  %v2339_v27 = vld [vmem:[%s2762_s18 + $0x20] sm:$0xff]  ;;  %v2340_v31 = vld [vmem:[%s2762_s18 + $0x28] sm:$0xff] }
  0x29   : > { %v2309_v32 = vld [vmem:[%s2745_s27 + $0x30] sm:$0xff]  ;;  %v2310_v36 = vld [vmem:[%s2745_s27 + $0x38] sm:$0xff]  ;;  %v2311_v40 = vld [vmem:[%s2745_s27 + $0x40] sm:$0xff] }
  0x2a   : > { %v2293_v33 = vld [vmem:[%s2750_s11 + $0x30] sm:$0xff]  ;;  %v2294_v37 = vld [vmem:[%s2750_s11 + $0x38] sm:$0xff]  ;;  %v2295_v41 = vld [vmem:[%s2750_s11 + $0x40] sm:$0xff] }
  0x2b   : > { %v2325_v34 = vld [vmem:[%s2757_s29 + $0x30] sm:$0xff]  ;;  %v2326_v38 = vld [vmem:[%s2757_s29 + $0x38] sm:$0xff]  ;;  %v2327_v44 = vld [vmem:[%s2757_s29 + $0x40] sm:$0xff] }
  0x2c   : > { %v2341_v35 = vld [vmem:[%s2762_s18 + $0x30] sm:$0xff]  ;;  %v2342_v39 = vld [vmem:[%s2762_s18 + $0x38] sm:$0xff]  ;;  %v2343_v45 = vld [vmem:[%s2762_s18 + $0x40] sm:$0xff] }
  0x2d   : > { %v2312_v56 = vld [vmem:[%s2745_s27 + $0x48] sm:$0xff] }
  0x2e   : > { %v2296_v57 = vld [vmem:[%s2750_s11 + $0x48] sm:$0xff] }
  0x2f   : > { %v2328_v61 = vld [vmem:[%s2757_s29 + $0x48] sm:$0xff] }
  0x30   : > { %v2344_v62 = vld [vmem:[%s2762_s18 + $0x48] sm:$0xff] }
  0x32   : > { %2023 = vmatmul.msk.bf16.gmra.mxu0 %vm592_vm1, %v2304_v12 }
  0x33   : > { %2103 = vmatmul.msk.bf16.gmra.mxu1 %vm592_vm1, %v2288_v13 }
  0x34   : > { %2183 = vmatmul.msk.bf16.gmra.mxu2 %vm592_vm1, %v2320_v14 }
  0x35   : > { %2263 = vmatmul.msk.bf16.gmra.mxu3 %vm592_vm1, %v2336_v15 }
  0x42   : > { %2024 = vmatmul.msk.bf16.gmra.mxu0 %vm592_vm1, %v2305_v16 }
  0x43   : > { %2104 = vmatmul.msk.bf16.gmra.mxu1 %vm592_vm1, %v2289_v17 }
  0x44   : > { %2184 = vmatmul.msk.bf16.gmra.mxu2 %vm592_vm1, %v2321_v18 }
  0x45   : > { %2264 = vmatmul.msk.bf16.gmra.mxu3 %vm592_vm1, %v2337_v19 }
  0x52   : > { %2025 = vmatmul.msk.bf16.gmra.mxu0 %vm592_vm1, %v2306_v20  ;;  %v2313_v20 = vld [vmem:[%s2745_s27 + $0x50] sm:$0xff] }
  0x53   : > { %2105 = vmatmul.msk.bf16.gmra.mxu1 %vm592_vm1, %v2290_v21  ;;  %v2297_v21 = vld [vmem:[%s2750_s11 + $0x50] sm:$0xff] }
  0x54   : > { %2185 = vmatmul.msk.bf16.gmra.mxu2 %vm592_vm1, %v2322_v22 }
  0x55   : > { %2265 = vmatmul.msk.bf16.gmra.mxu3 %vm592_vm1, %v2338_v23 }
  0x62   : > { %2026 = vmatmul.msk.bf16.gmra.mxu0 %vm592_vm1, %v2307_v24 }
  0x63   : > { %2106 = vmatmul.msk.bf16.gmra.mxu1 %vm592_vm1, %v2291_v25 }
  0x64   : > { %2186 = vmatmul.msk.bf16.gmra.mxu2 %vm592_vm1, %v2323_v26  ;;  %v2329_v26 = vld [vmem:[%s2757_s29 + $0x50] sm:$0xff] }
  0x65   : > { %2266 = vmatmul.msk.bf16.gmra.mxu3 %vm592_vm1, %v2339_v27  ;;  %v2345_v27 = vld [vmem:[%s2762_s18 + $0x50] sm:$0xff] }
  0x72   : > { %2027 = vmatmul.msk.bf16.gmra.mxu0 %vm592_vm1, %v2308_v28 }
  0x73   : > { %2107 = vmatmul.msk.bf16.gmra.mxu1 %vm592_vm1, %v2292_v29 }
  0x74   : > { %2187 = vmatmul.msk.bf16.gmra.mxu2 %vm592_vm1, %v2324_v30 }
  0x75   : > { %2267 = vmatmul.msk.bf16.gmra.mxu3 %vm592_vm1, %v2340_v31 }
  0x82   : > { %2028 = vmatmul.msk.bf16.gmra.mxu0 %vm592_vm1, %v2309_v32 }
  0x83   : > { %2108 = vmatmul.msk.bf16.gmra.mxu1 %vm592_vm1, %v2293_v33 }
  0x84   : > { %2188 = vmatmul.msk.bf16.gmra.mxu2 %vm592_vm1, %v2325_v34 }
  0x85   : > { %2268 = vmatmul.msk.bf16.gmra.mxu3 %vm592_vm1, %v2341_v35 }
  0x92   : > { %2029 = vmatmul.msk.bf16.gmra.mxu0 %vm592_vm1, %v2310_v36 }
  0x93   : > { %2109 = vmatmul.msk.bf16.gmra.mxu1 %vm592_vm1, %v2294_v37 }
  0x94   : > { %2189 = vmatmul.msk.bf16.gmra.mxu2 %vm592_vm1, %v2326_v38 }
  0x95   : > { %2269 = vmatmul.msk.bf16.gmra.mxu3 %vm592_vm1, %v2342_v39 }
  0x9f   : > { %v654_v42 = vpop.f32.mrf.mxu0 }
  0xa0   : > { %v874_v43 = vpop.f32.mrf.mxu1 }
  0xa1   : > { %v875_v46 = vadd.f32 %v874_v43, %v654_v42 }
  0xa2   : > { %2030 = vmatmul.msk.bf16.gmra.mxu0 %vm592_vm1, %v2311_v40 }
  0xa3   : > { %2110 = vmatmul.msk.bf16.gmra.mxu1 %vm592_vm1, %v2295_v41 }
  0xa4   : > { %2190 = vmatmul.msk.bf16.gmra.mxu2 %vm592_vm1, %v2327_v44 }
  0xa5   : > { %2270 = vmatmul.msk.bf16.gmra.mxu3 %vm592_vm1, %v2343_v45 }
  0xa7   : > { %v1127_v47 = vpop.f32.mrf.mxu2  ;;  %v656_v49 = vpop.f32.mrf.mxu0 }
  0xa8   : > { %v1412_v48 = vpop.f32.mrf.mxu3  ;;  %v876_v50 = vpop.f32.mrf.mxu1  ;;  %v1207_v51 = vadd.f32 %v1127_v47, %v875_v46  ;;  %v2314_v47 = vld [vmem:[%s2745_s27 + $0x58] sm:$0xff] }
  0xa9   : > { %v877_v53 = vadd.f32 %v876_v50, %v656_v49 }
  0xaa   : > { %v1492_v52 = vadd.f32 %v1412_v48, %v1207_v51  ;;  %v2298_v48 = vld [vmem:[%s2750_s11 + $0x58] sm:$0xff] }
  0xac   : > { %v1524_v63 = vmax.f32 %v1492_v52, 0.0 }
  0xae   : > { %v1657_v3 = vmul.f32 %v1524_v63, %v1524_v63 }
  0xaf   : > { %v1129_v54 = vpop.f32.mrf.mxu2  ;;  %v659_v59 = vpop.f32.mrf.mxu0 }
  0xb0   : > { %v1414_v55 = vpop.f32.mrf.mxu3  ;;  %v1208_v58 = vadd.f32 %v1129_v54, %v877_v53  ;;  %v879_v60 = vpop.f32.mrf.mxu1  ;;  %v2330_v53 = vld [vmem:[%s2757_s29 + $0x58] sm:$0xff] }
  0xb1   : > { %v880_v2 = vadd.f32 %v879_v60, %v659_v59  ;;  %v2346_v54 = vld [vmem:[%s2762_s18 + $0x58] sm:$0xff] }
  0xb2   : > { %v1493_v0 = vadd.f32 %v1414_v55, %v1208_v58  ;;  %2031 = vmatmul.msk.bf16.gmra.mxu0 %vm592_vm1, %v2312_v56 }
  0xb3   : > { %2111 = vmatmul.msk.bf16.gmra.mxu1 %vm592_vm1, %v2296_v57 }
  0xb4   : > { %v1525_v1 = vmax.f32 %v1493_v0, 0.0  ;;  %2191 = vmatmul.msk.bf16.gmra.mxu2 %vm592_vm1, %v2328_v61 }
  0xb5   : > { %2271 = vmatmul.msk.bf16.gmra.mxu3 %vm592_vm1, %v2344_v62 }
  0xb6   : > { %v2355_v4 = vpack.c.bf16 %v1525_v1, %v1524_v63  ;;  %v1620_v5 = vadd.f32 %v1525_v1, %v1524_v63  ;;  %v1658_v6 = vmul.f32 %v1525_v1, %v1525_v1 }
  0xb7   : > { %v1132_v7 = vpop.f32.mrf.mxu2  ;;  %v661_v11 = vpop.f32.mrf.mxu0 }
  0xb8   : > { %v1417_v8 = vpop.f32.mrf.mxu3  ;;  %v1689_v9 = vadd.f32 %v1658_v6, %v1657_v3  ;;  %v1209_v10 = vadd.f32 %v1132_v7, %v880_v2  ;;  %v881_v12 = vpop.f32.mrf.mxu1  ;;  %2356 = vst [vmem:[%s2846_s30] sm:$0xff] %v2355_v4  }
  0xb9   : > { %v882_v17 = vadd.f32 %v881_v12, %v661_v11  ;;  %v2299_v11 = vld [vmem:[%s2750_s11 + $0x60] sm:$0xff] }
  0xba   : > { %v1494_v13 = vadd.f32 %v1417_v8, %v1209_v10  ;;  %v2315_v10 = vld [vmem:[%s2745_s27 + $0x60] sm:$0xff] }
  0xbc   : > { %v1526_v14 = vmax.f32 %v1494_v13, 0.0 }
  0xbe   : > { %v1621_v15 = vadd.f32 %v1620_v5, %v1526_v14  ;;  %v1659_v16 = vmul.f32 %v1526_v14, %v1526_v14 }
  0xbf   : > { %v1134_v18 = vpop.f32.mrf.mxu2  ;;  %v664_v24 = vpop.f32.mrf.mxu0 }
  0xc0   : > { %v1419_v19 = vpop.f32.mrf.mxu3  ;;  %v1690_v22 = vadd.f32 %v1689_v9, %v1659_v16  ;;  %v1210_v23 = vadd.f32 %v1134_v18, %v882_v17  ;;  %v884_v25 = vpop.f32.mrf.mxu1  ;;  %v2331_v16 = vld [vmem:[%s2757_s29 + $0x60] sm:$0xff] }
  0xc1   : > { %v885_v30 = vadd.f32 %v884_v25, %v664_v24  ;;  %v2347_v17 = vld [vmem:[%s2762_s18 + $0x60] sm:$0xff] }
  0xc2   : > { %v1495_v28 = vadd.f32 %v1419_v19, %v1210_v23  ;;  %2032 = vmatmul.msk.bf16.gmra.mxu0 %vm592_vm1, %v2313_v20 }
  0xc3   : > { %2112 = vmatmul.msk.bf16.gmra.mxu1 %vm592_vm1, %v2297_v21 }
  0xc4   : > { %v1527_v29 = vmax.f32 %v1495_v28, 0.0  ;;  %2192 = vmatmul.msk.bf16.gmra.mxu2 %vm592_vm1, %v2329_v26 }
  0xc5   : > { %2272 = vmatmul.msk.bf16.gmra.mxu3 %vm592_vm1, %v2345_v27 }
  0xc6   : > { %v2360_v31 = vpack.c.bf16 %v1527_v29, %v1526_v14  ;;  %v1622_v32 = vadd.f32 %v1621_v15, %v1527_v29  ;;  %v1660_v33 = vmul.f32 %v1527_v29, %v1527_v29 }
  0xc7   : > { %v1137_v34 = vpop.f32.mrf.mxu2  ;;  %v666_v38 = vpop.f32.mrf.mxu0 }
  0xc8   : > { %v1422_v35 = vpop.f32.mrf.mxu3  ;;  %v1691_v36 = vadd.f32 %v1690_v22, %v1660_v33  ;;  %v1211_v37 = vadd.f32 %v1137_v34, %v885_v30  ;;  %v886_v39 = vpop.f32.mrf.mxu1  ;;  %2432 = vst [vmem:[%s2846_s30 + $0x8] sm:$0xff] %v2360_v31  }
  0xc9   : > { %v887_v44 = vadd.f32 %v886_v39, %v666_v38  ;;  %v2300_v38 = vld [vmem:[%s2750_s11 + $0x68] sm:$0xff] }
  0xca   : > { %v1496_v40 = vadd.f32 %v1422_v35, %v1211_v37  ;;  %v2316_v37 = vld [vmem:[%s2745_s27 + $0x68] sm:$0xff] }
  0xcc   : > { %v1528_v41 = vmax.f32 %v1496_v40, 0.0 }
  0xce   : > { %v1623_v42 = vadd.f32 %v1622_v32, %v1528_v41  ;;  %v1661_v43 = vmul.f32 %v1528_v41, %v1528_v41 }
  0xcf   : > { %v1139_v45 = vpop.f32.mrf.mxu2  ;;  %v669_v51 = vpop.f32.mrf.mxu0 }
  0xd0   : > { %v1424_v46 = vpop.f32.mrf.mxu3  ;;  %v1692_v49 = vadd.f32 %v1691_v36, %v1661_v43  ;;  %v1212_v50 = vadd.f32 %v1139_v45, %v887_v44  ;;  %v889_v52 = vpop.f32.mrf.mxu1  ;;  %v2332_v43 = vld [vmem:[%s2757_s29 + $0x68] sm:$0xff] }
  0xd1   : > { %v890_v57 = vadd.f32 %v889_v52, %v669_v51  ;;  %v2348_v44 = vld [vmem:[%s2762_s18 + $0x68] sm:$0xff] }
  0xd2   : > { %v1497_v55 = vadd.f32 %v1424_v46, %v1212_v50  ;;  %2033 = vmatmul.msk.bf16.gmra.mxu0 %vm592_vm1, %v2314_v47 }
  0xd3   : > { %2113 = vmatmul.msk.bf16.gmra.mxu1 %vm592_vm1, %v2298_v48 }
  0xd4   : > { %v1529_v56 = vmax.f32 %v1497_v55, 0.0  ;;  %2193 = vmatmul.msk.bf16.gmra.mxu2 %vm592_vm1, %v2330_v53 }
  0xd5   : > { %2273 = vmatmul.msk.bf16.gmra.mxu3 %vm592_vm1, %v2346_v54 }
  0xd6   : > { %v2365_v58 = vpack.c.bf16 %v1529_v56, %v1528_v41  ;;  %v1624_v59 = vadd.f32 %v1623_v42, %v1529_v56  ;;  %v1662_v60 = vmul.f32 %v1529_v56, %v1529_v56 }
  0xd7   : > { %v1142_v61 = vpop.f32.mrf.mxu2  ;;  %v671_v1 = vpop.f32.mrf.mxu0 }
  0xd8   : > { %v1427_v62 = vpop.f32.mrf.mxu3  ;;  %v1693_v63 = vadd.f32 %v1692_v49, %v1662_v60  ;;  %v1213_v0 = vadd.f32 %v1142_v61, %v890_v57  ;;  %v891_v2 = vpop.f32.mrf.mxu1  ;;  %2433 = vst [vmem:[%s2846_s30 + $0x10] sm:$0xff] %v2365_v58  }
  0xd9   : > { %v892_v7 = vadd.f32 %v891_v2, %v671_v1  ;;  %v2301_v1 = vld [vmem:[%s2750_s11 + $0x70] sm:$0xff] }
  0xda   : > { %v1498_v3 = vadd.f32 %v1427_v62, %v1213_v0  ;;  %v2317_v0 = vld [vmem:[%s2745_s27 + $0x70] sm:$0xff] }
  0xdc   : > { %v1530_v4 = vmax.f32 %v1498_v3, 0.0 }
  0xde   : > { %v1625_v5 = vadd.f32 %v1624_v59, %v1530_v4  ;;  %v1663_v6 = vmul.f32 %v1530_v4, %v1530_v4 }
  0xdf   : > { %v1144_v8 = vpop.f32.mrf.mxu2  ;;  %v674_v14 = vpop.f32.mrf.mxu0 }
  0xe0   : > { %v1429_v9 = vpop.f32.mrf.mxu3  ;;  %v1694_v12 = vadd.f32 %v1693_v63, %v1663_v6  ;;  %v1214_v13 = vadd.f32 %v1144_v8, %v892_v7  ;;  %v894_v15 = vpop.f32.mrf.mxu1  ;;  %v2333_v6 = vld [vmem:[%s2757_s29 + $0x70] sm:$0xff] }
  0xe1   : > { %v895_v20 = vadd.f32 %v894_v15, %v674_v14  ;;  %v2349_v7 = vld [vmem:[%s2762_s18 + $0x70] sm:$0xff] }
  0xe2   : > { %v1499_v18 = vadd.f32 %v1429_v9, %v1214_v13  ;;  %2034 = vmatmul.msk.bf16.gmra.mxu0 %vm592_vm1, %v2315_v10 }
  0xe3   : > { %2114 = vmatmul.msk.bf16.gmra.mxu1 %vm592_vm1, %v2299_v11 }
  0xe4   : > { %v1531_v19 = vmax.f32 %v1499_v18, 0.0  ;;  %2194 = vmatmul.msk.bf16.gmra.mxu2 %vm592_vm1, %v2331_v16 }
  0xe5   : > { %2274 = vmatmul.msk.bf16.gmra.mxu3 %vm592_vm1, %v2347_v17 }
  0xe6   : > { %v2370_v21 = vpack.c.bf16 %v1531_v19, %v1530_v4  ;;  %v1626_v22 = vadd.f32 %v1625_v5, %v1531_v19  ;;  %v1664_v23 = vmul.f32 %v1531_v19, %v1531_v19 }
  0xe7   : > { %v1147_v24 = vpop.f32.mrf.mxu2  ;;  %v676_v28 = vpop.f32.mrf.mxu0 }
  0xe8   : > { %v1432_v25 = vpop.f32.mrf.mxu3  ;;  %v1695_v26 = vadd.f32 %v1694_v12, %v1664_v23  ;;  %v1215_v27 = vadd.f32 %v1147_v24, %v895_v20  ;;  %v896_v29 = vpop.f32.mrf.mxu1  ;;  %2434 = vst [vmem:[%s2846_s30 + $0x18] sm:$0xff] %v2370_v21  }
  0xe9   : > { %v897_v34 = vadd.f32 %v896_v29, %v676_v28  ;;  %v2302_v28 = vld [vmem:[%s2750_s11 + $0x78] sm:$0xff] }
  0xea   : > { %v1500_v30 = vadd.f32 %v1432_v25, %v1215_v27  ;;  %v2318_v27 = vld [vmem:[%s2745_s27 + $0x78] sm:$0xff] }
  0xec   : > { %v1532_v31 = vmax.f32 %v1500_v30, 0.0 }
  0xee   : > { %v1627_v32 = vadd.f32 %v1626_v22, %v1532_v31  ;;  %v1665_v33 = vmul.f32 %v1532_v31, %v1532_v31 }
  0xef   : > { %v1149_v35 = vpop.f32.mrf.mxu2  ;;  %v679_v41 = vpop.f32.mrf.mxu0 }
  0xf0   : > { %v1434_v36 = vpop.f32.mrf.mxu3  ;;  %v1696_v39 = vadd.f32 %v1695_v26, %v1665_v33  ;;  %v1216_v40 = vadd.f32 %v1149_v35, %v897_v34  ;;  %v899_v42 = vpop.f32.mrf.mxu1  ;;  %v2334_v33 = vld [vmem:[%s2757_s29 + $0x78] sm:$0xff] }
  0xf1   : > { %v900_v47 = vadd.f32 %v899_v42, %v679_v41  ;;  %v2350_v34 = vld [vmem:[%s2762_s18 + $0x78] sm:$0xff]  ;;  %s2351_s18 = sshll.u32 %s2700_s17, 7 }
  0xf2   : > { %v1501_v45 = vadd.f32 %v1434_v36, %v1216_v40  ;;  %2035 = vmatmul.msk.bf16.gmra.mxu0 %vm592_vm1, %v2316_v37  ;;  %s1750_s12 = scalar_lea.hbm %s3026_s8, %s2351_s18 }
  0xf3   : > { %2115 = vmatmul.msk.bf16.gmra.mxu1 %vm592_vm1, %v2300_v38  ;;  %s1753_s29 = sshll.u32 %s1750_s12, 4  ;;  %s2942_s29 = int_to_ptr.hbm [resolvable:$true] %s1753_s29 }
  0xf4   : > { %v1533_v46 = vmax.f32 %v1501_v45, 0.0  ;;  %2195 = vmatmul.msk.bf16.gmra.mxu2 %vm592_vm1, %v2332_v43  ;;  %s2512_s18 = sshra.s32 %s2942_s29, 4  ;;  %s2513_s18 = int_to_ptr.hbm [resolvable:$true] %s2512_s18 }
  0xf5   : > { %2275 = vmatmul.msk.bf16.gmra.mxu3 %vm592_vm1, %v2348_v44  ;;  %s2514_s27 = scalar_lea.hbm %s2513_s18, 128  ;;  %p2519_p0 = scmp.lt.s32.totalorder %s2513_s18, %s3026_s8 }
  0xf6   : > { %v2375_v48 = vpack.c.bf16 %v1533_v46, %v1532_v31  ;;  %v1628_v49 = vadd.f32 %v1627_v32, %v1533_v46  ;;  %v1666_v50 = vmul.f32 %v1533_v46, %v1533_v46  ;;  %p2515_p11 = scmp.ne.s32.totalorder %s2513_s18, %s2514_s27  ;;  %p2520_p1 = scmp.lt.s32.totalorder %s2518_s0, %s2514_s27 }
  0xf7   : > { %v1152_v51 = vpop.f32.mrf.mxu2  ;;  %v681_v55 = vpop.f32.mrf.mxu0 }
  0xf8   : > { %v1437_v52 = vpop.f32.mrf.mxu3  ;;  %2435 = vst [vmem:[%s2846_s30 + $0x20] sm:$0xff] %v2375_v48   ;;  %v1697_v53 = vadd.f32 %v1696_v39, %v1666_v50  ;;  %v1217_v54 = vadd.f32 %v1152_v51, %v900_v47  ;;  %v901_v56 = vpop.f32.mrf.mxu1  ;;  %p2516_p12 = pnand %p2515_p11, %p2719_p5  ;;  %p2521_p2 = por %p2520_p1, %p2519_p0 }
  0xf9   : > { %v902_v61 = vadd.f32 %v901_v56, %v681_v55 }
  0xfa   : > { %v1502_v57 = vadd.f32 %v1437_v52, %v1217_v54  ;;  %p2517_p13 = pneg %p2516_p12 }
  0xfc   : > { %v1534_v58 = vmax.f32 %v1502_v57, 0.0  ;;  %p2522_p3 = pnand %p2521_p2, %p2517_p13 }
  0xfe   : > { %v1629_v59 = vadd.f32 %v1628_v49, %v1534_v58  ;;  %v1667_v60 = vmul.f32 %v1534_v58, %v1534_v58 }
  0xff   : > { %v1154_v62 = vpop.f32.mrf.mxu2  ;;  %v684_v4 = vpop.f32.mrf.mxu0 }
 0x100   : > { %v1439_v63 = vpop.f32.mrf.mxu3  ;;  %v1698_v2 = vadd.f32 %v1697_v53, %v1667_v60  ;;  %v1218_v3 = vadd.f32 %v1154_v62, %v902_v61  ;;  %v904_v5 = vpop.f32.mrf.mxu1 }
 0x101   : > { %v905_v10 = vadd.f32 %v904_v5, %v684_v4 }
 0x102   : > { %v1503_v8 = vadd.f32 %v1439_v63, %v1218_v3  ;;  %2036 = vmatmul.msk.bf16.gmra.mxu0 %vm592_vm1, %v2317_v0 }
 0x103   : > { %2116 = vmatmul.msk.bf16.gmra.mxu1 %vm592_vm1, %v2301_v1 }
 0x104   : > { %v1535_v9 = vmax.f32 %v1503_v8, 0.0  ;;  %2196 = vmatmul.msk.bf16.gmra.mxu2 %vm592_vm1, %v2333_v6 }
 0x105   : > { %2276 = vmatmul.msk.bf16.gmra.mxu3 %vm592_vm1, %v2349_v7 }
 0x106   : > { %v2380_v11 = vpack.c.bf16 %v1535_v9, %v1534_v58  ;;  %v1630_v12 = vadd.f32 %v1629_v59, %v1535_v9  ;;  %v1668_v13 = vmul.f32 %v1535_v9, %v1535_v9 }
 0x107   : > { %v1157_v14 = vpop.f32.mrf.mxu2  ;;  %v686_v18 = vpop.f32.mrf.mxu0 }
 0x108   : > { %v1442_v15 = vpop.f32.mrf.mxu3  ;;  %2436 = vst [vmem:[%s2846_s30 + $0x28] sm:$0xff] %v2380_v11   ;;  %v1699_v16 = vadd.f32 %v1698_v2, %v1668_v13  ;;  %v1219_v17 = vadd.f32 %v1157_v14, %v905_v10  ;;  %v906_v19 = vpop.f32.mrf.mxu1 }
 0x109   : > { %v907_v24 = vadd.f32 %v906_v19, %v686_v18 }
 0x10a   : > { %v1504_v20 = vadd.f32 %v1442_v15, %v1219_v17 }
 0x10c   : > { %v1536_v21 = vmax.f32 %v1504_v20, 0.0 }
 0x10e   : > { %v1631_v22 = vadd.f32 %v1630_v12, %v1536_v21  ;;  %v1669_v23 = vmul.f32 %v1536_v21, %v1536_v21 }
 0x10f   : > { %v1159_v25 = vpop.f32.mrf.mxu2  ;;  %v689_v31 = vpop.f32.mrf.mxu0 }
 0x110   : > { %v1444_v26 = vpop.f32.mrf.mxu3  ;;  %v1700_v29 = vadd.f32 %v1699_v16, %v1669_v23  ;;  %v1220_v30 = vadd.f32 %v1159_v25, %v907_v24  ;;  %v909_v32 = vpop.f32.mrf.mxu1 }
 0x111   : > { %v910_v37 = vadd.f32 %v909_v32, %v689_v31 }
 0x112   : > { %v1505_v35 = vadd.f32 %v1444_v26, %v1220_v30  ;;  %2037 = vmatmul.msk.bf16.gmra.mxu0 %vm592_vm1, %v2318_v27 }
 0x113   : > { %2117 = vmatmul.msk.bf16.gmra.mxu1 %vm592_vm1, %v2302_v28 }
 0x114   : > { %v1537_v36 = vmax.f32 %v1505_v35, 0.0  ;;  %2197 = vmatmul.msk.bf16.gmra.mxu2 %vm592_vm1, %v2334_v33 }
 0x115   : > { %2277 = vmatmul.msk.bf16.gmra.mxu3 %vm592_vm1, %v2350_v34 }
 0x116   : > { %v2385_v38 = vpack.c.bf16 %v1537_v36, %v1536_v21  ;;  %v1632_v39 = vadd.f32 %v1631_v22, %v1537_v36  ;;  %v1670_v40 = vmul.f32 %v1537_v36, %v1537_v36 }
 0x117   : > { %v1162_v41 = vpop.f32.mrf.mxu2  ;;  %v691_v45 = vpop.f32.mrf.mxu0 }
 0x118   : > { %v1447_v42 = vpop.f32.mrf.mxu3  ;;  %2437 = vst [vmem:[%s2846_s30 + $0x30] sm:$0xff] %v2385_v38   ;;  %v1701_v43 = vadd.f32 %v1700_v29, %v1670_v40  ;;  %v1221_v44 = vadd.f32 %v1162_v41, %v910_v37  ;;  %v911_v46 = vpop.f32.mrf.mxu1 }
 0x119   : > { %v912_v51 = vadd.f32 %v911_v46, %v691_v45 }
 0x11a   : > { %v1506_v47 = vadd.f32 %v1447_v42, %v1221_v44 }
 0x11c   : > { %v1538_v48 = vmax.f32 %v1506_v47, 0.0 }
 0x11e   : > { %v1633_v49 = vadd.f32 %v1632_v39, %v1538_v48  ;;  %v1671_v50 = vmul.f32 %v1538_v48, %v1538_v48 }
 0x11f   : > { %v1164_v52 = vpop.f32.mrf.mxu2  ;;  %v694_v56 = vpop.f32.mrf.mxu0 }
 0x120   : > { %v1449_v53 = vpop.f32.mrf.mxu3  ;;  %v1702_v54 = vadd.f32 %v1701_v43, %v1671_v50  ;;  %v1222_v55 = vadd.f32 %v1164_v52, %v912_v51  ;;  %v914_v57 = vpop.f32.mrf.mxu1 }
 0x121   : > { %v915_v60 = vadd.f32 %v914_v57, %v694_v56 }
 0x122   : > { %v1507_v58 = vadd.f32 %v1449_v53, %v1222_v55 }
 0x124   : > { %v1539_v59 = vmax.f32 %v1507_v58, 0.0 }
 0x126   : > { %v2390_v61 = vpack.c.bf16 %v1539_v59, %v1538_v48  ;;  %v1634_v62 = vadd.f32 %v1633_v49, %v1539_v59  ;;  %v1672_v63 = vmul.f32 %v1539_v59, %v1539_v59 }
 0x127   : > { %v1167_v0 = vpop.f32.mrf.mxu2  ;;  %v696_v4 = vpop.f32.mrf.mxu0 }
 0x128   : > { %v1452_v1 = vpop.f32.mrf.mxu3  ;;  %2438 = vst [vmem:[%s2846_s30 + $0x38] sm:$0xff] %v2390_v61   ;;  %v1703_v2 = vadd.f32 %v1702_v54, %v1672_v63  ;;  %v1223_v3 = vadd.f32 %v1167_v0, %v915_v60  ;;  %v916_v5 = vpop.f32.mrf.mxu1 }
 0x129   : > { %v917_v10 = vadd.f32 %v916_v5, %v696_v4 }
 0x12a   : > { %v1508_v6 = vadd.f32 %v1452_v1, %v1223_v3 }
 0x12c   : > { %v1540_v7 = vmax.f32 %v1508_v6, 0.0 }
 0x12e   : > { %v1635_v8 = vadd.f32 %v1634_v62, %v1540_v7  ;;  %v1673_v9 = vmul.f32 %v1540_v7, %v1540_v7 }
 0x12f   : > { %v1169_v11 = vpop.f32.mrf.mxu2  ;;  %v699_v15 = vpop.f32.mrf.mxu0 }
 0x130   : > { %v1454_v12 = vpop.f32.mrf.mxu3  ;;  %v1704_v13 = vadd.f32 %v1703_v2, %v1673_v9  ;;  %v1224_v14 = vadd.f32 %v1169_v11, %v917_v10  ;;  %v919_v16 = vpop.f32.mrf.mxu1 }
 0x131   : > { %v920_v19 = vadd.f32 %v919_v16, %v699_v15 }
 0x132   : > { %v1509_v17 = vadd.f32 %v1454_v12, %v1224_v14 }
 0x134   : > { %v1541_v18 = vmax.f32 %v1509_v17, 0.0 }
 0x136   : > { %v2395_v20 = vpack.c.bf16 %v1541_v18, %v1540_v7  ;;  %v1636_v21 = vadd.f32 %v1635_v8, %v1541_v18  ;;  %v1674_v22 = vmul.f32 %v1541_v18, %v1541_v18 }
 0x137   : > { %v1172_v23 = vpop.f32.mrf.mxu2  ;;  %v701_v27 = vpop.f32.mrf.mxu0 }
 0x138   : > { %v1457_v24 = vpop.f32.mrf.mxu3  ;;  %2439 = vst [vmem:[%s2846_s30 + $0x40] sm:$0xff] %v2395_v20   ;;  %v1705_v25 = vadd.f32 %v1704_v13, %v1674_v22  ;;  %v1225_v26 = vadd.f32 %v1172_v23, %v920_v19  ;;  %v921_v28 = vpop.f32.mrf.mxu1 }
 0x139   : > { %v922_v33 = vadd.f32 %v921_v28, %v701_v27 }
 0x13a   : > { %v1510_v29 = vadd.f32 %v1457_v24, %v1225_v26 }
 0x13c   : > { %v1542_v30 = vmax.f32 %v1510_v29, 0.0 }
 0x13e   : > { %v1637_v31 = vadd.f32 %v1636_v21, %v1542_v30  ;;  %v1675_v32 = vmul.f32 %v1542_v30, %v1542_v30 }
 0x13f   : > { %v1174_v34 = vpop.f32.mrf.mxu2  ;;  %v704_v38 = vpop.f32.mrf.mxu0 }
 0x140   : > { %v1459_v35 = vpop.f32.mrf.mxu3  ;;  %v1706_v36 = vadd.f32 %v1705_v25, %v1675_v32  ;;  %v1226_v37 = vadd.f32 %v1174_v34, %v922_v33  ;;  %v924_v39 = vpop.f32.mrf.mxu1 }
 0x141   : > { %v925_v48 = vadd.f32 %v924_v39, %v704_v38 }
 0x142   : > { %v1511_v40 = vadd.f32 %v1459_v35, %v1226_v37 }
 0x144   : > { %v1543_v41 = vmax.f32 %v1511_v40, 0.0 }
 0x146   : > { %v2400_v42 = vpack.c.bf16 %v1543_v41, %v1542_v30  ;;  %v2905_v43 = vadd.f32 %v1637_v31, %v1543_v41  ;;  %v1676_v44 = vmul.f32 %v1543_v41, %v1543_v41 }
 0x147   : > { %v1177_v45 = vpop.f32.mrf.mxu2  ;;  %v706_v49 = vpop.f32.mrf.mxu0 }
 0x148   : > { %v1462_v46 = vpop.f32.mrf.mxu3  ;;  %2440 = vst [vmem:[%s2846_s30 + $0x48] sm:$0xff] %v2400_v42   ;;  %v2908_v47 = vadd.f32 %v1706_v36, %v1676_v44  ;;  %v926_v50 = vpop.f32.mrf.mxu1  ;;  %v1227_v51 = vadd.f32 %v1177_v45, %v925_v48 }
 0x149   : > { %v927_v52 = vadd.f32 %v926_v50, %v706_v49 }
 0x14a   : > { %v1512_v55 = vadd.f32 %v1462_v46, %v1227_v51 }
 0x14c   : > { %v2910_v60 = vmax.f32 %v1512_v55, 0.0 }
 0x14f   : > { %v1179_v53 = vpop.f32.mrf.mxu2  ;;  %v709_v57 = vpop.f32.mrf.mxu0 }
 0x150   : > { %v1464_v54 = vpop.f32.mrf.mxu3  ;;  %v1228_v56 = vadd.f32 %v1179_v53, %v927_v52  ;;  %v929_v58 = vpop.f32.mrf.mxu1 }
 0x151   : > { %v930_v1 = vadd.f32 %v929_v58, %v709_v57  ;;  %v1677_v58 = vmul.f32 %v2910_v60, %v2910_v60 }
 0x152   : > { %v1513_v59 = vadd.f32 %v1464_v54, %v1228_v56 }
 0x154   : > { %v2912_v61 = vmax.f32 %v1513_v59, 0.0 }
 0x156   : > { %v2405_v62 = vpack.c.bf16 %v2912_v61, %v2910_v60 }
 0x157   : > { %v1182_v63 = vpop.f32.mrf.mxu2  ;;  %v711_v2 = vpop.f32.mrf.mxu0 }
 0x158   : > { %v1467_v0 = vpop.f32.mrf.mxu3  ;;  %2441 = vst [vmem:[%s2846_s30 + $0x50] sm:$0xff] %v2405_v62   ;;  %v931_v3 = vpop.f32.mrf.mxu1  ;;  %v1229_v4 = vadd.f32 %v1182_v63, %v930_v1  ;;  %v1678_v62 = vmul.f32 %v2912_v61, %v2912_v61  ;;  %v1639_v1 = vadd.f32 %v2905_v43, %v2910_v60 }
 0x159   : > { %v932_v5 = vadd.f32 %v931_v3, %v711_v2 }
 0x15a   : > { %v1514_v8 = vadd.f32 %v1467_v0, %v1229_v4  ;;  %v1708_v4 = vadd.f32 %v2908_v47, %v1677_v58 }
 0x15c   : > { %v1546_v13 = vmax.f32 %v1514_v8, 0.0  ;;  %v1640_v8 = vadd.f32 %v1639_v1, %v2912_v61 }
 0x15f   : > { %v1184_v6 = vpop.f32.mrf.mxu2  ;;  %v714_v10 = vpop.f32.mrf.mxu0 }
 0x160   : > { %v1469_v7 = vpop.f32.mrf.mxu3  ;;  %v1230_v9 = vadd.f32 %v1184_v6, %v932_v5  ;;  %v934_v11 = vpop.f32.mrf.mxu1  ;;  %v1679_v5 = vmul.f32 %v1546_v13, %v1546_v13 }
 0x161   : > { %v935_v18 = vadd.f32 %v934_v11, %v714_v10  ;;  %v1709_v10 = vadd.f32 %v1708_v4, %v1678_v62 }
 0x162   : > { %v1515_v12 = vadd.f32 %v1469_v7, %v1230_v9 }
 0x163   : > { %v1710_v43 = vadd.f32 %v1709_v10, %v1679_v5 }
 0x164   : > { %v2917_v14 = vmax.f32 %v1515_v12, 0.0  ;;  %v1641_v12 = vadd.f32 %v1640_v8, %v1546_v13 }
 0x166   : > { %v2410_v15 = vpack.c.bf16 %v2917_v14, %v1546_v13  ;;  %v1680_v11 = vmul.f32 %v2917_v14, %v2917_v14 }
 0x167   : > { %v1187_v16 = vpop.f32.mrf.mxu2  ;;  %v716_v19 = vpop.f32.mrf.mxu0 }
 0x168   : > { %v1472_v17 = vpop.f32.mrf.mxu3  ;;  %2442 = vst [vmem:[%s2846_s30 + $0x58] sm:$0xff] %v2410_v15   ;;  %v936_v20 = vpop.f32.mrf.mxu1  ;;  %v1231_v21 = vadd.f32 %v1187_v16, %v935_v18  ;;  %v1642_v18 = vadd.f32 %v1641_v12, %v2917_v14 }
 0x169   : > { %v937_v22 = vadd.f32 %v936_v20, %v716_v19  ;;  %v1711_v19 = vadd.f32 %v1710_v43, %v1680_v11 }
 0x16a   : > { %v1516_v25 = vadd.f32 %v1472_v17, %v1231_v21 }
 0x16c   : > { %v1548_v30 = vmax.f32 %v1516_v25, 0.0 }
 0x16e   : > { %v1681_v60 = vmul.f32 %v1548_v30, %v1548_v30 }
 0x16f   : > { %v1189_v23 = vpop.f32.mrf.mxu2  ;;  %v719_v27 = vpop.f32.mrf.mxu0 }
 0x170   : > { %v1474_v24 = vpop.f32.mrf.mxu3  ;;  %v1232_v26 = vadd.f32 %v1189_v23, %v937_v22  ;;  %v939_v28 = vpop.f32.mrf.mxu1  ;;  %v1643_v22 = vadd.f32 %v1642_v18, %v1548_v30 }
 0x171   : > { %v940_v35 = vadd.f32 %v939_v28, %v719_v27 }
 0x172   : > { %v1517_v29 = vadd.f32 %v1474_v24, %v1232_v26  ;;  %v1712_v24 = vadd.f32 %v1711_v19, %v1681_v60 }
 0x174   : > { %v1549_v31 = vmax.f32 %v1517_v29, 0.0 }
 0x176   : > { %v2415_v32 = vpack.c.bf16 %v1549_v31, %v1548_v30  ;;  %v1682_v20 = vmul.f32 %v1549_v31, %v1549_v31  ;;  %v1644_v26 = vadd.f32 %v1643_v22, %v1549_v31 }
 0x177   : > { %v1192_v33 = vpop.f32.mrf.mxu2  ;;  %v721_v36 = vpop.f32.mrf.mxu0 }
 0x178   : > { %v1477_v34 = vpop.f32.mrf.mxu3  ;;  %2443 = vst [vmem:[%s2846_s30 + $0x60] sm:$0xff] %v2415_v32   ;;  %v941_v37 = vpop.f32.mrf.mxu1  ;;  %v1233_v38 = vadd.f32 %v1192_v33, %v940_v35  ;;  %v1713_v27 = vadd.f32 %v1712_v24, %v1682_v20 }
 0x179   : > { %v942_v39 = vadd.f32 %v941_v37, %v721_v36 }
 0x17a   : > { %v1518_v42 = vadd.f32 %v1477_v34, %v1233_v38 }
 0x17c   : > { %v1550_v49 = vmax.f32 %v1518_v42, 0.0 }
 0x17e   : > { %v1683_v25 = vmul.f32 %v1550_v49, %v1550_v49  ;;  %v1645_v32 = vadd.f32 %v1644_v26, %v1550_v49 }
 0x17f   : > { %v1194_v40 = vpop.f32.mrf.mxu2  ;;  %v724_v45 = vpop.f32.mrf.mxu0 }
 0x180   : > { %v1479_v41 = vpop.f32.mrf.mxu3  ;;  %v1234_v44 = vadd.f32 %v1194_v40, %v942_v39  ;;  %v944_v46 = vpop.f32.mrf.mxu1  ;;  %v1714_v14 = vadd.f32 %v1713_v27, %v1683_v25 }
 0x181   : > { %v945_v54 = vadd.f32 %v944_v46, %v724_v45 }
 0x182   : > { %v1519_v48 = vadd.f32 %v1479_v41, %v1234_v44 }
 0x184   : > { %v1551_v50 = vmax.f32 %v1519_v48, 0.0 }
 0x186   : > { %v2420_v51 = vpack.c.bf16 %v1551_v50, %v1550_v49  ;;  %v1684_v33 = vmul.f32 %v1551_v50, %v1551_v50  ;;  %v1646_v34 = vadd.f32 %v1645_v32, %v1551_v50 }
 0x187   : > { %v1197_v52 = vpop.f32.mrf.mxu2  ;;  %v726_v55 = vpop.f32.mrf.mxu0 }
 0x188   : > { %v1482_v53 = vpop.f32.mrf.mxu3  ;;  %2444 = vst [vmem:[%s2846_s30 + $0x68] sm:$0xff] %v2420_v51   ;;  %v946_v56 = vpop.f32.mrf.mxu1  ;;  %v1235_v57 = vadd.f32 %v1197_v52, %v945_v54  ;;  %v1715_v30 = vadd.f32 %v1714_v14, %v1684_v33 }
 0x189   : > { %v947_v59 = vadd.f32 %v946_v56, %v726_v55 }
 0x18a   : > { %v1520_v2 = vadd.f32 %v1482_v53, %v1235_v57 }
 0x18c   : > { %v1552_v15 = vmax.f32 %v1520_v2, 0.0 }
 0x18e   : > { %v1685_v35 = vmul.f32 %v1552_v15, %v1552_v15  ;;  %v1647_v31 = vadd.f32 %v1646_v34, %v1552_v15 }
 0x18f   : > { %v1199_v63 = vpop.f32.mrf.mxu2  ;;  %v729_v6 = vpop.f32.mrf.mxu0 }
 0x190   : > { %v1484_v0 = vpop.f32.mrf.mxu3  ;;  %v1236_v3 = vadd.f32 %v1199_v63, %v947_v59  ;;  %v949_v7 = vpop.f32.mrf.mxu1  ;;  %v1716_v42 = vadd.f32 %v1715_v30, %v1685_v35 }
 0x191   : > { %v950_v17 = vadd.f32 %v949_v7, %v729_v6 }
 0x192   : > { %v1521_v9 = vadd.f32 %v1484_v0, %v1236_v3 }
 0x194   : > { %v1553_v16 = vmax.f32 %v1521_v9, 0.0 }
 0x196   : > { %v2425_v47 = vpack.c.bf16 %v1553_v16, %v1552_v15  ;;  %v1686_v39 = vmul.f32 %v1553_v16, %v1553_v16  ;;  %v1648_v44 = vadd.f32 %v1647_v31, %v1553_v16 }
 0x197   : > { %v1202_v21 = vpop.f32.mrf.mxu2  ;;  %v731_v28 = vpop.f32.mrf.mxu0 }
 0x198   : > { %v1487_v61 = vpop.f32.mrf.mxu3  ;;  %2445 = vst [vmem:[%s2846_s30 + $0x70] sm:$0xff] %v2425_v47   ;;  %v1237_v23 = vadd.f32 %v1202_v21, %v950_v17  ;;  %v951_v29 = vpop.f32.mrf.mxu1  ;;  %v1717_v48 = vadd.f32 %v1716_v42, %v1686_v39 }
 0x199   : > { %v952_v37 = vadd.f32 %v951_v29, %v731_v28 }
 0x19a   : > { %v1522_v13 = vadd.f32 %v1487_v61, %v1237_v23 }
 0x19c   : > { %v1554_v36 = vmax.f32 %v1522_v13, 0.0 }
 0x19e   : > { %v1687_v45 = vmul.f32 %v1554_v36, %v1554_v36  ;;  %v1649_v49 = vadd.f32 %v1648_v44, %v1554_v36 }
 0x19f   : > { %v1204_v38 = vpop.f32.mrf.mxu2 }
 0x1a0   : > { %v1238_v40 = vadd.f32 %v1204_v38, %v952_v37  ;;  %v1489_v41 = vpop.f32.mrf.mxu3  ;;  %v1718_v51 = vadd.f32 %v1717_v48, %v1687_v45 }
 0x1a2   : > { %v1523_v46 = vadd.f32 %v1489_v41, %v1238_v40 }
 0x1a4   : > { %v1555_v50 = vmax.f32 %v1523_v46, 0.0 }
 0x1a6   : > { %v2430_v52 = vpack.c.bf16 %v1555_v50, %v1554_v36  ;;  %v1650_v53 = vadd.f32 %v1649_v49, %v1555_v50  ;;  %v1688_v54 = vmul.f32 %v1555_v50, %v1555_v50 }
 0x1a8   : > { %2446 = vst [vmem:[%s2846_s30 + $0x78] sm:$0xff] %v2430_v52   ;;  %v1651_v55 = vrot.slane %v1650_v53, 4  ;;  %v1719_v56 = vadd.f32 %v1718_v51, %v1688_v54 }
 0x1a9   : > { %2525 = shalt.err (!%p2522_p3)
}
 0x1aa   : > { %s2622_s30 = smov 64   ;;  %s2623_s25 = smov 4   ;;  %v1652_v57 = vadd.f32 %v1651_v55, %v1650_v53  ;;  %v1720_v58 = vrot.slane %v1719_v56, 4 }
 0x1ab   : > { %2447 = dma.vmem_to_hbm [thread:$0]  (%p2719_p5), %s2940_s20, 2048, %s2942_s29, %s1729_s28, %s2622_s30, %s2622_s30, %s2623_s25  }
 0x1ac   : > { %v1721_v59 = vadd.f32 %v1720_v58, %v1719_v56  ;;  %v1653_v62 = vrot.slane %v1652_v57, 2  ;;  %s1766_s0 = scalar_lea.hbm %s3027_s9, %s2283_s26  ;;  %s1733_s18 = sand.u32 1, %s2700_s17  }
 0x1ad   : > { %s1780_s12 = scalar_lea.hbm %s3028_s10, %s2283_s26  ;;  %s3046_s3 = sshll.u32 %s2837_s21, 3 }
 0x1ae   : > { %v1722_v63 = vrot.slane %v1721_v59, 2  ;;  %v1654_v0 = vadd.f32 %v1653_v62, %v1652_v57  ;;  %s412_s4 = scalar_lea.vmem [#allocation4], %s3046_s3  ;;  %s1770_s6 = sshll.u32 %s1766_s0, 4  ;;  %s1771_s6 = int_to_ptr.hbm [resolvable:$true] %s1770_s6 }
 0x1af   : > { %s1768_s5 = sshll.u32 %s412_s4, 4  ;;  %s3047_s20 = smov %s3046_s3  ;;  %s1769_s5 = int_to_ptr.vmem [resolvable:$true] %s1768_s5 }
 0x1b0   : > { %v1655_v1 = vrot.slane %v1654_v0, 1  ;;  %v1723_v2 = vadd.f32 %v1722_v63, %v1721_v59  ;;  %s419_s29 = scalar_lea.vmem [#allocation6], %s3047_s20  ;;  %s1784_s28 = sshll.u32 %s1780_s12, 4  ;;  %s2974_s28 = int_to_ptr.hbm [resolvable:$true] %s1784_s28 }
 0x1b1   : > { %s1782_s25 = sshll.u32 %s419_s29, 4  ;;  %s1734_s3 = scalar_lea.sflag [#allocation5], %s1733_s18  ;;  %s2972_s25 = int_to_ptr.vmem [resolvable:$true] %s1782_s25 }
 0x1b2   : > { %v1656_v3 = vadd.f32 %v1655_v1, %v1654_v0  ;;  %v1724_v4 = vrot.slane %v1723_v2, 1  ;;  %s2540_s17 = sshra.s32 %s1771_s6, 4  ;;  %s2546_s1 = scalar_lea.hbm %s3027_s9, 16  ;;  %s2541_s17 = int_to_ptr.hbm [resolvable:$true] %s2540_s17 }
 0x1b3   : > { %s2542_s26 = scalar_lea.hbm %s2541_s17, 8  ;;  %p2547_p9 = scmp.lt.s32.totalorder %s2541_s17, %s3027_s9 }
 0x1b4   : > { %1726 = vst [vmem:[%s412_s4] sm:$0xff] %v1656_v3  ;;  %v1725_v5 = vadd.f32 %v1724_v4, %v1723_v2  ;;  %p2543_p4 = scmp.ne.s32.totalorder %s2541_s17, %s2542_s26  ;;  %p2548_p10 = scmp.lt.s32.totalorder %s2546_s1, %s2542_s26 }
 0x1b6   : > { %p2544_p7 = pnand %p2543_p4, %p2719_p5  ;;  %p2549_p11 = por %p2548_p10, %p2547_p9 }
 0x1b8   : > { %p2545_p8 = pneg %p2544_p7 }
 0x1ba   : > { %p2550_p12 = pnand %p2549_p11, %p2545_p8 }
 0x1bc   : > { %2553 = shalt.err (!%p2550_p12)
}
 0x1bd   : > { %2448 = dma.vmem_to_hbm [thread:$0]  (%p2719_p5), %s1769_s5, 128, %s1771_s6, %s1734_s3   ;;  %1727 = vst [vmem:[%s419_s29] sm:$0xff] %v1725_v5 }
 0x1be   : > { %s2568_s4 = sshra.s32 %s2974_s28, 4  ;;  %s2574_s12 = scalar_lea.hbm %s3028_s10, 16  ;;  %s2569_s4 = int_to_ptr.hbm [resolvable:$true] %s2568_s4 }
 0x1bf   : > { %s2570_s18 = scalar_lea.hbm %s2569_s4, 8  ;;  %p2575_p2 = scmp.lt.s32.totalorder %s2569_s4, %s3028_s10 }
 0x1c0   : > { %p2571_p13 = scmp.ne.s32.totalorder %s2569_s4, %s2570_s18  ;;  %p2576_p3 = scmp.lt.s32.totalorder %s2574_s12, %s2570_s18 }
 0x1c2   : > { %p2572_p0 = pnand %p2571_p13, %p2719_p5  ;;  %p2577_p4 = por %p2576_p3, %p2575_p2 }
 0x1c4   : > { %p2573_p1 = pneg %p2572_p0 }
 0x1c6   : > { %p2578_p7 = pnand %p2577_p4, %p2573_p1 }
 0x1c8   : > { %2581 = shalt.err (!%p2578_p7)
}
 0x1c9   : > { %2449 = dma.vmem_to_hbm [thread:$0]  (%p2719_p5), %s2972_s25, 128, %s2974_s28, %s1734_s3  }
 0x1ca PF: > { %p2463_p8 = scmp.ge.s32.totalorder %s2620_s16, 2  ;;  %s1796_s5 = sand.u32 1, %s2608_s13  }
 0x1cb   : > { %s1797_s6 = scalar_lea.sflag [#allocation3], %s1796_s5 }
 0x1cc   : > { %p2454_p9 = pnand %p2463_p8, %p2723_p6 }
 0x1ce   : > { %p2455_p10 = pneg %p2454_p9 }
 0x1d0   : > { %2599 = dma.done.wait (%p2455_p10), %s1797_s6, 2048  }
 0x1d1   : > { %2601 = vsyncadd (%p2455_p10), %s1797_s6, 4294965248  ;;  %s3048_s29 = sadd.s32 4294967294, %s2620_s16  }
 0x1d2   : > { %s1806_s26 = sand.u32 1, %s3048_s29  }
 0x1d3   : > { %s1807_s21 = scalar_lea.sflag [#allocation5], %s1806_s26 }
 0x1d4   : > { %2603 = dma.done.wait (%p2455_p10), %s1807_s21, 256  }
 0x1d5   : > { %2605 = vsyncadd (%p2455_p10), %s1807_s21, 4294967040  ;;  %p24_p5 = scmp.ge.s32.totalorder %s2704_s19, 4   ;;  %s3049_s13 = smov %s2612_s14 }
 0x1d6   : > { %s3050_s14 = smov %s2616_s15  ;;  %s3051_s15 = smov %s2717_s22 }
 0x1d7   : > { %s3052_s16 = smov %s2704_s19  ;;  %26 = sbr.rel (!%p24_p5) target bundleno = 13 (0xd), region = 128 }
 0x1dc   :  { %1823 = vsyncpa [#allocation3], 1 }
 0x1dd   :  { %1825 = vsyncpa [#allocation3 + $0x1], 1 }
 0x1de   :  { %1826 = vsyncpa [#allocation5], 1 }
 0x1df   :  { %1828 = vsyncpa [#allocation5 + $0x1], 1 }

</bundles_post_ra>
